<compile_context>
chip_gen: v7x
topology: tpu7x:2x2x1
jax: 0.10.0
libtpu: 0.0.40
codegen_flags: <defaults>
</compile_context>

<pallas_src>
import functools

import jax
import jax.numpy as jnp
from jax.experimental import pallas as pl
from jax.experimental.pallas import tpu as pltpu


def _round_up(n, m):
    return ((n + m - 1) // m) * m


def cbow_kernel(x_ref, mask_ref, emb_ref, wt_ref, out_ref, masked_ref, *, B, C, V):
    # x_ref:      (B*C,)         int32   SMEM   flattened token ids
    # mask_ref:   (B*C,)         float32 SMEM   flattened mask weights
    # emb_ref:    (V_rows, H)    float32 VMEM   embedding table (rows 8-aligned)
    # wt_ref:     (H, V_pad)     float32 VMEM   linear weight, pre-transposed, lane-dense
    # out_ref:    (B_pad, V_pad) float32 VMEM   lane/sublane-dense output
    # masked_ref: (B_pad, H)     float32 VMEM   scratch: mask-weighted context sum
    B_pad, H = masked_ref.shape

    # Zero the accumulator (also covers the padded sublane rows beyond B).
    masked_ref[...] = jnp.zeros_like(masked_ref)

    # Weighted embedding gather (replaces one-hot + MXU contraction over V):
    #   masked[b, :] = sum_c mask[b, c] * emb[x[b, c], :]
    # B and C are tiny static trip counts; token ids / weights are scalar SMEM
    # reads driving dynamic-sublane row loads of the embedding table.
    for b in range(B):
        acc = jnp.zeros((1, H), jnp.float32)
        for c in range(C):
            tok = x_ref[b * C + c]                         # scalar int32 (SMEM)
            wgt = mask_ref[b * C + c]                      # scalar f32   (SMEM)
            # Keep the row load in-bounds for invalid ids (PyTorch would raise;
            # valid ids in [0, V) are untouched).
            tok = jnp.minimum(jnp.maximum(tok, 0), V - 1)
            acc = acc + wgt * emb_ref[pl.ds(tok, 1), :]    # (1, H) weighted row
        masked_ref[pl.ds(b, 1), :] = acc                   # static row store

    # Projection on the MXU: (B_pad, H) @ (H, V_pad) -> (B_pad, V_pad).
    out = jnp.dot(masked_ref[...], wt_ref[...], preferred_element_type=jnp.float32)
    out_ref[...] = out.astype(out_ref.dtype)               # full-vreg, lane-dense store


def cbow_prepare_params(emb, w):
    """One-time parameter layout prep (hoisted out of the forward path).

    emb: (V, H) embedding table -> (V_rows, H) f32, rows zero-padded to x8.
    w:   (V, H) linear weight   -> (H, V_pad)  f32, pre-transposed, columns
         zero-padded to x128 (lane-dense MXU operand / output).
    """
    V, H = emb.shape
    V_rows = _round_up(V, 8)
    V_pad = _round_up(V, 128)
    emb_p = jnp.pad(emb.astype(jnp.float32), ((0, V_rows - V), (0, 0)))
    wt_p = jnp.pad(w.astype(jnp.float32).T, ((0, 0), (0, V_pad - V)))
    return emb_p, wt_p


@functools.partial(jax.jit, static_argnames=("vocab_size",))
def cbow_forward(x, mask, emb_p, wt_p, *, vocab_size):
    B, C = x.shape
    H, V_pad = wt_p.shape
    B_pad = _round_up(max(B, 8), 8)            # >= 8 sublanes for the output

    # Layout plumbing only (tiny arrays): flatten to 1D for cheap SMEM storage.
    # NOTE: assumes mask has exactly B*C elements, i.e. shape (B, 1, C).
    x_s = x.reshape(B * C).astype(jnp.int32)
    m_s = mask.reshape(B * C).astype(jnp.float32)

    kernel = functools.partial(cbow_kernel, B=B, C=C, V=vocab_size)

    out_p = pl.pallas_call(
        kernel,
        out_shape=jax.ShapeDtypeStruct((B_pad, V_pad), jnp.float32),
        in_specs=[
            pl.BlockSpec(memory_space=pltpu.MemorySpace.SMEM),   # token ids
            pl.BlockSpec(memory_space=pltpu.MemorySpace.SMEM),   # mask weights
            pl.BlockSpec(memory_space=pltpu.MemorySpace.VMEM),   # embedding table
            pl.BlockSpec(memory_space=pltpu.MemorySpace.VMEM),   # W^T (lane-dense)
        ],
        out_specs=pl.BlockSpec(memory_space=pltpu.MemorySpace.VMEM),
        scratch_shapes=[pltpu.VMEM((B_pad, H), jnp.float32)],
    )(x_s, m_s, emb_p, wt_p)

    return out_p[:B, :vocab_size]                          # strip padding


def cbow_reference(x, mask, emb, w):
    hidden = emb[x]                                        # (B, C, H)
    masked = jnp.matmul(mask, hidden)                      # (B, 1, H)
    masked = jnp.squeeze(masked, axis=1)                   # (B, H)
    return masked @ w.T                                    # (B, V)


if __name__ == "__main__":
    # Small shapes consistent with the module's forward.
    B, C = 2, 8          # batch, context window
    V, H = 64, 32        # vocab_size, hidden_layer_size

    key = jax.random.PRNGKey(0)
    k_x, k_mask, k_emb, k_w = jax.random.split(key, 4)

    # Deterministic "parameters" (Embedding ~ N(0,1); Linear ~ U(-1/sqrt(H), 1/sqrt(H))).
    emb = jax.random.normal(k_emb, (V, H), dtype=jnp.float32)
    bound = 1.0 / (H ** 0.5)
    w = jax.random.uniform(k_w, (V, H), dtype=jnp.float32,
                           minval=-bound, maxval=bound)

    # Inputs.
    x = jax.random.randint(k_x, (B, C), 0, V, dtype=jnp.int32)
    mask = jax.random.uniform(k_mask, (B, 1, C), dtype=jnp.float32)

    # One-time parameter prep (hoisted out of the per-call forward path).
    emb_p, wt_p = cbow_prepare_params(emb, w)
    emb_p, wt_p = jax.block_until_ready((emb_p, wt_p))

    out = cbow_forward(x, mask, emb_p, wt_p, vocab_size=V)
    out = jax.block_until_ready(out)

    ref = cbow_reference(x, mask, emb, w)
    assert out.shape == (B, V)
    assert jnp.allclose(out, ref, atol=1e-4, rtol=1e-4)

    print("KERNEL_OK")
</pallas_src>

<mosaic_0001>
module attributes {stable_mosaic.version = 11 : i64} {
  func.func @cbow_kernel(%arg0: memref<16xi32, #tpu.memory_space<smem>>, %arg1: memref<16xf32, #tpu.memory_space<smem>>, %arg2: memref<64x32xf32, #tpu.memory_space<vmem>>, %arg3: memref<32x128xf32, #tpu.memory_space<vmem>>, %arg4: memref<8x128xf32, #tpu.memory_space<vmem>>, %arg5: memref<8x32xf32, #tpu.memory_space<vmem>>) attributes {dimension_semantics = [], scalar_prefetch = 0 : i64, scratch_operands = 1 : i64, tpu.core_type = #tpu.core_type<tc>} {
    %cst = arith.constant 0.000000e+00 : f32
    %0 = vector.broadcast %cst : f32 to vector<8x32xf32>
    %c0 = arith.constant 0 : index
    %c0_0 = arith.constant 0 : index
    %1 = vector.load %arg5[%c0, %c0_0] : memref<8x32xf32, #tpu.memory_space<vmem>>, vector<8x32xf32>
    tpu.vector_store %arg5[%c0, %c0_0], %0 {strides = array<i32>} : memref<8x32xf32, #tpu.memory_space<vmem>>, vector<8x32xf32>,
    %cst_1 = arith.constant 0.000000e+00 : f32
    %2 = vector.broadcast %cst_1 : f32 to vector<1x32xf32>
    %c0_2 = arith.constant 0 : index
    %3 = memref.load %arg0[%c0_2] : memref<16xi32, #tpu.memory_space<smem>>
    %c0_3 = arith.constant 0 : index
    %4 = memref.load %arg1[%c0_3] : memref<16xf32, #tpu.memory_space<smem>>
    %c0_i32 = arith.constant 0 : i32
    %5 = arith.maxsi %3, %c0_i32 : i32
    %c63_i32 = arith.constant 63 : i32
    %6 = arith.minsi %5, %c63_i32 : i32
    %7 = arith.index_cast %6 : i32 to index
    %c0_4 = arith.constant 0 : index
    %8 = vector.load %arg2[%7, %c0_4] : memref<64x32xf32, #tpu.memory_space<vmem>>, vector<1x32xf32>
    %9 = vector.broadcast %4 : f32 to vector<1x32xf32>
    %10 = arith.mulf %9, %8 : vector<1x32xf32>
    %11 = arith.addf %2, %10 : vector<1x32xf32>
    %c1 = arith.constant 1 : index
    %12 = memref.load %arg0[%c1] : memref<16xi32, #tpu.memory_space<smem>>
    %c1_5 = arith.constant 1 : index
    %13 = memref.load %arg1[%c1_5] : memref<16xf32, #tpu.memory_space<smem>>
    %c0_i32_6 = arith.constant 0 : i32
    %14 = arith.maxsi %12, %c0_i32_6 : i32
    %c63_i32_7 = arith.constant 63 : i32
    %15 = arith.minsi %14, %c63_i32_7 : i32
    %16 = arith.index_cast %15 : i32 to index
    %c0_8 = arith.constant 0 : index
    %17 = vector.load %arg2[%16, %c0_8] : memref<64x32xf32, #tpu.memory_space<vmem>>, vector<1x32xf32>
    %18 = vector.broadcast %13 : f32 to vector<1x32xf32>
    %19 = arith.mulf %18, %17 : vector<1x32xf32>
    %20 = arith.addf %11, %19 : vector<1x32xf32>
    %c2 = arith.constant 2 : index
    %21 = memref.load %arg0[%c2] : memref<16xi32, #tpu.memory_space<smem>>
    %c2_9 = arith.constant 2 : index
    %22 = memref.load %arg1[%c2_9] : memref<16xf32, #tpu.memory_space<smem>>
    %c0_i32_10 = arith.constant 0 : i32
    %23 = arith.maxsi %21, %c0_i32_10 : i32
    %c63_i32_11 = arith.constant 63 : i32
    %24 = arith.minsi %23, %c63_i32_11 : i32
    %25 = arith.index_cast %24 : i32 to index
    %c0_12 = arith.constant 0 : index
    %26 = vector.load %arg2[%25, %c0_12] : memref<64x32xf32, #tpu.memory_space<vmem>>, vector<1x32xf32>
    %27 = vector.broadcast %22 : f32 to vector<1x32xf32>
    %28 = arith.mulf %27, %26 : vector<1x32xf32>
    %29 = arith.addf %20, %28 : vector<1x32xf32>
    %c3 = arith.constant 3 : index
    %30 = memref.load %arg0[%c3] : memref<16xi32, #tpu.memory_space<smem>>
    %c3_13 = arith.constant 3 : index
    %31 = memref.load %arg1[%c3_13] : memref<16xf32, #tpu.memory_space<smem>>
    %c0_i32_14 = arith.constant 0 : i32
    %32 = arith.maxsi %30, %c0_i32_14 : i32
    %c63_i32_15 = arith.constant 63 : i32
    %33 = arith.minsi %32, %c63_i32_15 : i32
    %34 = arith.index_cast %33 : i32 to index
    %c0_16 = arith.constant 0 : index
    %35 = vector.load %arg2[%34, %c0_16] : memref<64x32xf32, #tpu.memory_space<vmem>>, vector<1x32xf32>
    %36 = vector.broadcast %31 : f32 to vector<1x32xf32>
    %37 = arith.mulf %36, %35 : vector<1x32xf32>
    %38 = arith.addf %29, %37 : vector<1x32xf32>
    %c4 = arith.constant 4 : index
    %39 = memref.load %arg0[%c4] : memref<16xi32, #tpu.memory_space<smem>>
    %c4_17 = arith.constant 4 : index
    %40 = memref.load %arg1[%c4_17] : memref<16xf32, #tpu.memory_space<smem>>
    %c0_i32_18 = arith.constant 0 : i32
    %41 = arith.maxsi %39, %c0_i32_18 : i32
    %c63_i32_19 = arith.constant 63 : i32
    %42 = arith.minsi %41, %c63_i32_19 : i32
    %43 = arith.index_cast %42 : i32 to index
    %c0_20 = arith.constant 0 : index
    %44 = vector.load %arg2[%43, %c0_20] : memref<64x32xf32, #tpu.memory_space<vmem>>, vector<1x32xf32>
    %45 = vector.broadcast %40 : f32 to vector<1x32xf32>
    %46 = arith.mulf %45, %44 : vector<1x32xf32>
    %47 = arith.addf %38, %46 : vector<1x32xf32>
    %c5 = arith.constant 5 : index
    %48 = memref.load %arg0[%c5] : memref<16xi32, #tpu.memory_space<smem>>
    %c5_21 = arith.constant 5 : index
    %49 = memref.load %arg1[%c5_21] : memref<16xf32, #tpu.memory_space<smem>>
    %c0_i32_22 = arith.constant 0 : i32
    %50 = arith.maxsi %48, %c0_i32_22 : i32
    %c63_i32_23 = arith.constant 63 : i32
    %51 = arith.minsi %50, %c63_i32_23 : i32
    %52 = arith.index_cast %51 : i32 to index
    %c0_24 = arith.constant 0 : index
    %53 = vector.load %arg2[%52, %c0_24] : memref<64x32xf32, #tpu.memory_space<vmem>>, vector<1x32xf32>
    %54 = vector.broadcast %49 : f32 to vector<1x32xf32>
    %55 = arith.mulf %54, %53 : vector<1x32xf32>
    %56 = arith.addf %47, %55 : vector<1x32xf32>
    %c6 = arith.constant 6 : index
    %57 = memref.load %arg0[%c6] : memref<16xi32, #tpu.memory_space<smem>>
    %c6_25 = arith.constant 6 : index
    %58 = memref.load %arg1[%c6_25] : memref<16xf32, #tpu.memory_space<smem>>
    %c0_i32_26 = arith.constant 0 : i32
    %59 = arith.maxsi %57, %c0_i32_26 : i32
    %c63_i32_27 = arith.constant 63 : i32
    %60 = arith.minsi %59, %c63_i32_27 : i32
    %61 = arith.index_cast %60 : i32 to index
    %c0_28 = arith.constant 0 : index
    %62 = vector.load %arg2[%61, %c0_28] : memref<64x32xf32, #tpu.memory_space<vmem>>, vector<1x32xf32>
    %63 = vector.broadcast %58 : f32 to vector<1x32xf32>
    %64 = arith.mulf %63, %62 : vector<1x32xf32>
    %65 = arith.addf %56, %64 : vector<1x32xf32>
    %c7 = arith.constant 7 : index
    %66 = memref.load %arg0[%c7] : memref<16xi32, #tpu.memory_space<smem>>
    %c7_29 = arith.constant 7 : index
    %67 = memref.load %arg1[%c7_29] : memref<16xf32, #tpu.memory_space<smem>>
    %c0_i32_30 = arith.constant 0 : i32
    %68 = arith.maxsi %66, %c0_i32_30 : i32
    %c63_i32_31 = arith.constant 63 : i32
    %69 = arith.minsi %68, %c63_i32_31 : i32
    %70 = arith.index_cast %69 : i32 to index
    %c0_32 = arith.constant 0 : index
    %71 = vector.load %arg2[%70, %c0_32] : memref<64x32xf32, #tpu.memory_space<vmem>>, vector<1x32xf32>
    %72 = vector.broadcast %67 : f32 to vector<1x32xf32>
    %73 = arith.mulf %72, %71 : vector<1x32xf32>
    %74 = arith.addf %65, %73 : vector<1x32xf32>
    %c0_33 = arith.constant 0 : index
    %c0_34 = arith.constant 0 : index
    %75 = vector.load %arg5[%c0_33, %c0_34] : memref<8x32xf32, #tpu.memory_space<vmem>>, vector<1x32xf32>
    tpu.vector_store %arg5[%c0_33, %c0_34], %74 {strides = array<i32>} : memref<8x32xf32, #tpu.memory_space<vmem>>, vector<1x32xf32>,
    %cst_35 = arith.constant 0.000000e+00 : f32
    %76 = vector.broadcast %cst_35 : f32 to vector<1x32xf32>
    %c8 = arith.constant 8 : index
    %77 = memref.load %arg0[%c8] : memref<16xi32, #tpu.memory_space<smem>>
    %c8_36 = arith.constant 8 : index
    %78 = memref.load %arg1[%c8_36] : memref<16xf32, #tpu.memory_space<smem>>
    %c0_i32_37 = arith.constant 0 : i32
    %79 = arith.maxsi %77, %c0_i32_37 : i32
    %c63_i32_38 = arith.constant 63 : i32
    %80 = arith.minsi %79, %c63_i32_38 : i32
    %81 = arith.index_cast %80 : i32 to index
    %c0_39 = arith.constant 0 : index
    %82 = vector.load %arg2[%81, %c0_39] : memref<64x32xf32, #tpu.memory_space<vmem>>, vector<1x32xf32>
    %83 = vector.broadcast %78 : f32 to vector<1x32xf32>
    %84 = arith.mulf %83, %82 : vector<1x32xf32>
    %85 = arith.addf %76, %84 : vector<1x32xf32>
    %c9 = arith.constant 9 : index
    %86 = memref.load %arg0[%c9] : memref<16xi32, #tpu.memory_space<smem>>
    %c9_40 = arith.constant 9 : index
    %87 = memref.load %arg1[%c9_40] : memref<16xf32, #tpu.memory_space<smem>>
    %c0_i32_41 = arith.constant 0 : i32
    %88 = arith.maxsi %86, %c0_i32_41 : i32
    %c63_i32_42 = arith.constant 63 : i32
    %89 = arith.minsi %88, %c63_i32_42 : i32
    %90 = arith.index_cast %89 : i32 to index
    %c0_43 = arith.constant 0 : index
    %91 = vector.load %arg2[%90, %c0_43] : memref<64x32xf32, #tpu.memory_space<vmem>>, vector<1x32xf32>
    %92 = vector.broadcast %87 : f32 to vector<1x32xf32>
    %93 = arith.mulf %92, %91 : vector<1x32xf32>
    %94 = arith.addf %85, %93 : vector<1x32xf32>
    %c10 = arith.constant 10 : index
    %95 = memref.load %arg0[%c10] : memref<16xi32, #tpu.memory_space<smem>>
    %c10_44 = arith.constant 10 : index
    %96 = memref.load %arg1[%c10_44] : memref<16xf32, #tpu.memory_space<smem>>
    %c0_i32_45 = arith.constant 0 : i32
    %97 = arith.maxsi %95, %c0_i32_45 : i32
    %c63_i32_46 = arith.constant 63 : i32
    %98 = arith.minsi %97, %c63_i32_46 : i32
    %99 = arith.index_cast %98 : i32 to index
    %c0_47 = arith.constant 0 : index
    %100 = vector.load %arg2[%99, %c0_47] : memref<64x32xf32, #tpu.memory_space<vmem>>, vector<1x32xf32>
    %101 = vector.broadcast %96 : f32 to vector<1x32xf32>
    %102 = arith.mulf %101, %100 : vector<1x32xf32>
    %103 = arith.addf %94, %102 : vector<1x32xf32>
    %c11 = arith.constant 11 : index
    %104 = memref.load %arg0[%c11] : memref<16xi32, #tpu.memory_space<smem>>
    %c11_48 = arith.constant 11 : index
    %105 = memref.load %arg1[%c11_48] : memref<16xf32, #tpu.memory_space<smem>>
    %c0_i32_49 = arith.constant 0 : i32
    %106 = arith.maxsi %104, %c0_i32_49 : i32
    %c63_i32_50 = arith.constant 63 : i32
    %107 = arith.minsi %106, %c63_i32_50 : i32
    %108 = arith.index_cast %107 : i32 to index
    %c0_51 = arith.constant 0 : index
    %109 = vector.load %arg2[%108, %c0_51] : memref<64x32xf32, #tpu.memory_space<vmem>>, vector<1x32xf32>
    %110 = vector.broadcast %105 : f32 to vector<1x32xf32>
    %111 = arith.mulf %110, %109 : vector<1x32xf32>
    %112 = arith.addf %103, %111 : vector<1x32xf32>
    %c12 = arith.constant 12 : index
    %113 = memref.load %arg0[%c12] : memref<16xi32, #tpu.memory_space<smem>>
    %c12_52 = arith.constant 12 : index
    %114 = memref.load %arg1[%c12_52] : memref<16xf32, #tpu.memory_space<smem>>
    %c0_i32_53 = arith.constant 0 : i32
    %115 = arith.maxsi %113, %c0_i32_53 : i32
    %c63_i32_54 = arith.constant 63 : i32
    %116 = arith.minsi %115, %c63_i32_54 : i32
    %117 = arith.index_cast %116 : i32 to index
    %c0_55 = arith.constant 0 : index
    %118 = vector.load %arg2[%117, %c0_55] : memref<64x32xf32, #tpu.memory_space<vmem>>, vector<1x32xf32>
    %119 = vector.broadcast %114 : f32 to vector<1x32xf32>
    %120 = arith.mulf %119, %118 : vector<1x32xf32>
    %121 = arith.addf %112, %120 : vector<1x32xf32>
    %c13 = arith.constant 13 : index
    %122 = memref.load %arg0[%c13] : memref<16xi32, #tpu.memory_space<smem>>
    %c13_56 = arith.constant 13 : index
    %123 = memref.load %arg1[%c13_56] : memref<16xf32, #tpu.memory_space<smem>>
    %c0_i32_57 = arith.constant 0 : i32
    %124 = arith.maxsi %122, %c0_i32_57 : i32
    %c63_i32_58 = arith.constant 63 : i32
    %125 = arith.minsi %124, %c63_i32_58 : i32
    %126 = arith.index_cast %125 : i32 to index
    %c0_59 = arith.constant 0 : index
    %127 = vector.load %arg2[%126, %c0_59] : memref<64x32xf32, #tpu.memory_space<vmem>>, vector<1x32xf32>
    %128 = vector.broadcast %123 : f32 to vector<1x32xf32>
    %129 = arith.mulf %128, %127 : vector<1x32xf32>
    %130 = arith.addf %121, %129 : vector<1x32xf32>
    %c14 = arith.constant 14 : index
    %131 = memref.load %arg0[%c14] : memref<16xi32, #tpu.memory_space<smem>>
    %c14_60 = arith.constant 14 : index
    %132 = memref.load %arg1[%c14_60] : memref<16xf32, #tpu.memory_space<smem>>
    %c0_i32_61 = arith.constant 0 : i32
    %133 = arith.maxsi %131, %c0_i32_61 : i32
    %c63_i32_62 = arith.constant 63 : i32
    %134 = arith.minsi %133, %c63_i32_62 : i32
    %135 = arith.index_cast %134 : i32 to index
    %c0_63 = arith.constant 0 : index
    %136 = vector.load %arg2[%135, %c0_63] : memref<64x32xf32, #tpu.memory_space<vmem>>, vector<1x32xf32>
    %137 = vector.broadcast %132 : f32 to vector<1x32xf32>
    %138 = arith.mulf %137, %136 : vector<1x32xf32>
    %139 = arith.addf %130, %138 : vector<1x32xf32>
    %c15 = arith.constant 15 : index
    %140 = memref.load %arg0[%c15] : memref<16xi32, #tpu.memory_space<smem>>
    %c15_64 = arith.constant 15 : index
    %141 = memref.load %arg1[%c15_64] : memref<16xf32, #tpu.memory_space<smem>>
    %c0_i32_65 = arith.constant 0 : i32
    %142 = arith.maxsi %140, %c0_i32_65 : i32
    %c63_i32_66 = arith.constant 63 : i32
    %143 = arith.minsi %142, %c63_i32_66 : i32
    %144 = arith.index_cast %143 : i32 to index
    %c0_67 = arith.constant 0 : index
    %145 = vector.load %arg2[%144, %c0_67] : memref<64x32xf32, #tpu.memory_space<vmem>>, vector<1x32xf32>
    %146 = vector.broadcast %141 : f32 to vector<1x32xf32>
    %147 = arith.mulf %146, %145 : vector<1x32xf32>
    %148 = arith.addf %139, %147 : vector<1x32xf32>
    %c1_68 = arith.constant 1 : index
    %c0_69 = arith.constant 0 : index
    %149 = vector.load %arg5[%c1_68, %c0_69] : memref<8x32xf32, #tpu.memory_space<vmem>>, vector<1x32xf32>
    tpu.vector_store %arg5[%c1_68, %c0_69], %148 {strides = array<i32>} : memref<8x32xf32, #tpu.memory_space<vmem>>, vector<1x32xf32>,
    %c0_70 = arith.constant 0 : index
    %c0_71 = arith.constant 0 : index
    %150 = vector.load %arg5[%c0_70, %c0_71] : memref<8x32xf32, #tpu.memory_space<vmem>>, vector<8x32xf32>
    %c0_72 = arith.constant 0 : index
    %c0_73 = arith.constant 0 : index
    %151 = vector.load %arg3[%c0_72, %c0_73] : memref<32x128xf32, #tpu.memory_space<vmem>>, vector<32x128xf32>
    %cst_74 = arith.constant dense<0.000000e+00> : vector<8x128xf32>
    %152 = tpu.matmul %150, %151, %cst_74 {dimension_numbers = #tpu.dot_dimension_numbers<[1], [0], [0], [1], [0, 0, 1, 1], [], []>} : vector<8x32xf32>, vector<32x128xf32>, vector<8x128xf32> -> vector<8x128xf32>
    %c0_75 = arith.constant 0 : index
    %c0_76 = arith.constant 0 : index
    %153 = vector.load %arg4[%c0_75, %c0_76] : memref<8x128xf32, #tpu.memory_space<vmem>>, vector<8x128xf32>
    tpu.vector_store %arg4[%c0_75, %c0_76], %152 {strides = array<i32>} : memref<8x128xf32, #tpu.memory_space<vmem>>, vector<8x128xf32>,
    return
  }
}

</mosaic_0001>

<bundles_post_ra>
// kernel: cbow_forward.1
= control target key start
LH: loop header
LB: loop body
LE: loop exit
PB: predicated region body
PF: predicated region fallthrough
CT: control target
= control target key end

     0   :  { %9 = vsyncpa [#allocation4], 0  ;;  %s717_s0 = inlined_call_operand.vmem [shape: s32[16], index: 0, kind: input, shape index: {}]   ;;  %s718_s1 = inlined_call_operand.vmem [shape: f32[16], index: 1, kind: input, shape index: {}]   ;;  %s719_s2 = inlined_call_operand.vmem [shape: f32[64,32], index: 2, kind: input, shape index: {}]   ;;  %s720_s3 = inlined_call_operand.vmem [shape: f32[32,128], index: 3, kind: input, shape index: {}]   ;;  %s721_s4 = inlined_call_operand.vmem [shape: f32[8,128], index: 4, kind: output, shape index: {}]  }
   0x1   :  { %s17_s17 = sshll.u32 %s717_s0, 4  ;;  %s18_s17 = int_to_ptr.vmem [resolvable:$true] %s17_s17 }
   0x2   :  { %10 = vsyncpa [#allocation6], 0  ;;  %s27_s20 = sshll.u32 %s718_s1, 4  ;;  %s494_s21 = scalar_lea.vmem %s18_s17, 16  ;;  %s28_s20 = int_to_ptr.vmem [resolvable:$true] %s27_s20 }
   0x3   :  { %p495_p0 = scmp.ne.s32.totalorder %s18_s17, %s494_s21  ;;  %p499_p1 = scmp.lt.s32.totalorder %s18_s17, %s18_s17 }
   0x4   :  { %p500_p2 = scmp.lt.s32.totalorder %s494_s21, %s494_s21 }
   0x6   :  { %p501_p3 = por %p500_p2, %p499_p1 }
   0x8   :  { %p502_p4 = pnand %p501_p3, %p495_p0 }
   0xa   :  { %505 = shalt.err (!%p502_p4)
}
   0xb   :  { %s522_s22 = smov [#allocation3]   ;;  %s506_s23 = scalar_lea.vmem %s28_s20, 16 }
   0xc   :  { %20 = dma.vmem_to_smem %s18_s17, 16, %s522_s22, [#allocation4]  }
   0xd   :  { %p507_p5 = scmp.ne.s32.totalorder %s28_s20, %s506_s23  ;;  %p511_p6 = scmp.lt.s32.totalorder %s28_s20, %s28_s20 }
   0xe   :  { %p512_p7 = scmp.lt.s32.totalorder %s506_s23, %s506_s23 }
  0x10   :  { %p513_p8 = por %p512_p7, %p511_p6 }
  0x12   :  { %p514_p9 = pnand %p513_p8, %p507_p5 }
  0x14   :  { %517 = shalt.err (!%p514_p9)
}
  0x15   :  { %s523_s0 = smov [#allocation5]  }
  0x16   :  { %30 = dma.vmem_to_smem %s28_s20, 16, %s523_s0, [#allocation6]  }
  0x17   :  { %518 = dma.done.wait [#allocation4], 16  }
  0x18   :  { %519 = vsyncadd [#allocation4], 4294967280 }
  0x19   :  { %520 = dma.done.wait [#allocation6], 16  }
  0x1a   :  { %521 = vsyncadd [#allocation6], 4294967280 }
  0x1b   :  { %41 = sfence }
  0x1c   :  { %v224_v0 = vld [vmem:[%s720_s3] sm:$0xff]  ;;  %v225_v1 = vld [vmem:[%s720_s3 + $0x8] sm:$0xff]  ;;  %v226_v2 = vld [vmem:[%s720_s3 + $0x10] sm:$0xff]  ;;  %vm42_vm0 = vcmask 261120   ;;  %v524_v3 = vmov 0.0|0.0   ;;  %v525_v6 = vmov 0.0  }
  0x1d   :  { %483 = vmatprep.subr.bf16.mxu0 %v524_v3  ;;  %v484_v4 = vpack.c.bf16 %v225_v1, %v224_v0  ;;  %v227_v5 = vld [vmem:[%s720_s3 + $0x18] sm:$0xff]  ;;  %43 = vst.msk [vmem:[#allocation2] sm:$0xff] %vm42_vm0, %v525_v6  ;;  %s44_s5 = sld [smem:[#allocation3]]  ;;  %s329_s7 = sld [smem:[#allocation3 + $0x1]]  ;;  %vm526_vm1 = vmmov 0   ;;  %vm132_vm2 = vcmask 253952  }
  0x1e   :  { %s571_s6 = sld [smem:[#allocation5]]  ;;  %s573_s8 = sld [smem:[#allocation5 + $0x1]]  ;;  %v487_v7 = vpack.c.bf16 %v227_v5, %v226_v2  ;;  %480 = vmatprep.mubr.msk.f32.mxu0 %vm526_vm1, %v525_v6 }
  0x1f   :  { %485 = vmatpush3.bf16.msra.mxu0 %v484_v4  ;;  %s575_s9 = sld [smem:[#allocation3 + $0x2]]  ;;  %s579_s11 = sld [smem:[#allocation3 + $0x3]] }
  0x20   :  { %s577_s10 = sld [smem:[#allocation5 + $0x2]]  ;;  %486 = vmatprep.subr.bf16.mxu0 %v524_v3  ;;  %s581_s3 = sld [smem:[#allocation5 + $0x3]] }
  0x21   :  { %s583_s12 = sld [smem:[#allocation3 + $0x4]]  ;;  %s587_s14 = sld [smem:[#allocation3 + $0x5]] }
  0x22   :  { %s585_s13 = sld [smem:[#allocation5 + $0x4]]  ;;  %s589_s15 = sld [smem:[#allocation5 + $0x5]] }
  0x23   :  { %488 = vmatpush3.bf16.msra.mxu0 %v487_v7  ;;  %p46_p10 = scmp.gt.s32.totalorder %s44_s5, 0  ;;  %p324_p11 = scmp.lt.s32.totalorder %s44_s5, 63 }
  0x24   :  { %p57_p12 = scmp.gt.s32.totalorder %s329_s7, 0  ;;  %p331_p13 = scmp.lt.s32.totalorder %s329_s7, 63  ;;  %v52_v9 = vstv %s571_s6  ;;  %v63_v11 = vstv %s573_s8 }
  0x25   :  { %s723_s5 = smov (!%p46_p10, %s44_s5), 0  ;;  %p68_p0 = scmp.gt.s32.totalorder %s575_s9, 0 }
  0x26   :  { %s725_s7 = smov (!%p57_p12, %s329_s7), 0  ;;  %s727_s5 = smov (!%p324_p11, %s723_s5), 63  ;;  %v74_v14 = vstv %s577_s10  ;;  %v85_v19 = vstv %s581_s3 }
  0x27   :  { %s729_s7 = smov (!%p331_p13, %s725_s7), 63  ;;  %s50_s18 = scalar_lea.vmem %s719_s2, %s727_s5 }
  0x28   :  { %s61_s21 = scalar_lea.vmem %s719_s2, %s729_s7  ;;  %p338_p1 = scmp.lt.s32.totalorder %s575_s9, 63  ;;  %v51_v8 = vld [vmem:[%s50_s18] sm:$0x1]  ;;  %v96_v23 = vstv %s585_s13  ;;  %v107_v27 = vstv %s589_s15 }
  0x29   :  { %v62_v10 = vld [vmem:[%s61_s21] sm:$0x1]  ;;  %s731_s9 = smov (!%p68_p0, %s575_s9), 0  ;;  %p79_p2 = scmp.gt.s32.totalorder %s579_s11, 0  ;;  %v53_v12 = vmul.f32 %v52_v9, %v51_v8 }
  0x2a   :  { %p345_p3 = scmp.lt.s32.totalorder %s579_s11, 63  ;;  %s733_s9 = smov (!%p338_p1, %s731_s9), 63  ;;  %v64_v13 = vmul.f32 %v63_v11, %v62_v10 }
  0x2b   :  { %s735_s11 = smov (!%p79_p2, %s579_s11), 0  ;;  %s72_s0 = scalar_lea.vmem %s719_s2, %s733_s9 }
  0x2c   :  { %p90_p4 = scmp.gt.s32.totalorder %s583_s12, 0  ;;  %v73_v15 = vld [vmem:[%s72_s0] sm:$0x1]  ;;  %s737_s11 = smov (!%p345_p3, %s735_s11), 63  ;;  %v65_v16 = vadd.f32 %v64_v13, %v53_v12 }
  0x2d   :  { %v75_v17 = vmul.f32 %v74_v14, %v73_v15  ;;  %s83_s26 = scalar_lea.vmem %s719_s2, %s737_s11  ;;  %p352_p5 = scmp.lt.s32.totalorder %s583_s12, 63 }
  0x2e   :  { %s91_s1 = scalar_select %p90_p4, %s583_s12, 0  ;;  %v84_v18 = vld [vmem:[%s83_s26] sm:$0x1] }
  0x2f   :  { %p101_p6 = scmp.gt.s32.totalorder %s587_s14, 0  ;;  %p359_p7 = scmp.lt.s32.totalorder %s587_s14, 63  ;;  %v76_v20 = vadd.f32 %v75_v17, %v65_v16  ;;  %v86_v21 = vmul.f32 %v85_v19, %v84_v18 }
  0x30   :  { %s739_s1 = smov (!%p352_p5, %s91_s1), 63  ;;  %s364_s30 = sld [smem:[#allocation3 + $0x6]] }
  0x31   :  { %s741_s14 = smov (!%p101_p6, %s587_s14), 0  ;;  %s94_s29 = scalar_lea.vmem %s719_s2, %s739_s1  ;;  %v87_v24 = vadd.f32 %v86_v21, %v76_v20 }
  0x32   :  { %v95_v22 = vld [vmem:[%s94_s29] sm:$0x1]  ;;  %s743_s14 = smov (!%p359_p7, %s741_s14), 63  ;;  %s365_s5 = sld [smem:[#allocation5 + $0x6]] }
  0x33   :  { %s371_s6 = sld [smem:[#allocation3 + $0x7]]  ;;  %s105_s9 = scalar_lea.vmem %s719_s2, %s743_s14  ;;  %v97_v25 = vmul.f32 %v96_v23, %v95_v22 }
  0x34   :  { %s626_s10 = sld [smem:[#allocation5 + $0x7]]  ;;  %s628_s11 = sld [smem:[#allocation3 + $0x8]]  ;;  %v106_v26 = vld [vmem:[%s105_s9] sm:$0x1] }
  0x35   :  { %s630_s3 = sld [smem:[#allocation5 + $0x8]]  ;;  %s633_s12 = sld [smem:[#allocation3 + $0x9]]  ;;  %v98_v28 = vadd.f32 %v97_v25, %v87_v24  ;;  %v108_v29 = vmul.f32 %v107_v27, %v106_v26 }
  0x36   :  { %s635_s13 = sld [smem:[#allocation5 + $0x9]]  ;;  %p112_p8 = scmp.gt.s32.totalorder %s364_s30, 0 }
  0x37   :  { %p366_p9 = scmp.lt.s32.totalorder %s364_s30, 63  ;;  %s637_s16 = sld [smem:[#allocation3 + $0xa]]  ;;  %v109_v31 = vadd.f32 %v108_v29, %v98_v28 }
  0x38   :  { %s639_s14 = sld [smem:[#allocation5 + $0xa]]  ;;  %s745_s30 = smov (!%p112_p8, %s364_s30), 0  ;;  %v118_v30 = vstv %s365_s5 }
  0x39   :  { %p123_p10 = scmp.gt.s32.totalorder %s371_s6, 0  ;;  %p373_p11 = scmp.lt.s32.totalorder %s371_s6, 63 }
  0x3a   :  { %s747_s30 = smov (!%p366_p9, %s745_s30), 63  ;;  %p136_p12 = scmp.gt.s32.totalorder %s628_s11, 0  ;;  %v129_v34 = vstv %s626_s10 }
  0x3b   :  { %s749_s6 = smov (!%p123_p10, %s371_s6), 0  ;;  %s116_s18 = scalar_lea.vmem %s719_s2, %s747_s30  ;;  %v142_v40 = vstv %s630_s3 }
  0x3c   :  { %v117_v32 = vld [vmem:[%s116_s18] sm:$0x1]  ;;  %s751_s6 = smov (!%p373_p11, %s749_s6), 63  ;;  %p380_p13 = scmp.lt.s32.totalorder %s628_s11, 63  ;;  %v153_v42 = vstv %s635_s13 }
  0x3d   :  { %v119_v33 = vmul.f32 %v118_v30, %v117_v32  ;;  %s137_s19 = scalar_select %p136_p12, %s628_s11, 0 }
  0x3e   :  { %s127_s22 = scalar_lea.vmem %s719_s2, %s751_s6  ;;  %p147_p0 = scmp.gt.s32.totalorder %s633_s12, 0  ;;  %v164_v46 = vstv %s639_s14 }
  0x3f   :  { %v120_v35 = vadd.f32 %v119_v33, %v109_v31  ;;  %v128_v36 = vld [vmem:[%s127_s22] sm:$0x1]  ;;  %p387_p1 = scmp.lt.s32.totalorder %s633_s12, 63  ;;  %s753_s19 = smov (!%p380_p13, %s137_s19), 63 }
  0x40   :  { %v130_v37 = vmul.f32 %v129_v34, %v128_v36  ;;  %s755_s12 = smov (!%p147_p0, %s633_s12), 0  ;;  %s140_s1 = scalar_lea.vmem %s719_s2, %s753_s19 }
  0x41   :  { %p158_p2 = scmp.gt.s32.totalorder %s637_s16, 0  ;;  %s757_s12 = smov (!%p387_p1, %s755_s12), 63  ;;  %v141_v39 = vld [vmem:[%s140_s1] sm:$0x1] }
  0x42   :  { %v131_v38 = vadd.f32 %v130_v37, %v120_v35  ;;  %s151_s27 = scalar_lea.vmem %s719_s2, %s757_s12  ;;  %p394_p3 = scmp.lt.s32.totalorder %s637_s16, 63  ;;  %v143_v43 = vmul.f32 %v142_v40, %v141_v39 }
  0x43   :  { %s159_s24 = scalar_select %p158_p2, %s637_s16, 0  ;;  %v152_v41 = vld [vmem:[%s151_s27] sm:$0x1] }
  0x44   :  { %133 = vst.msk [vmem:[#allocation2] sm:$0x1] %vm132_vm2, %v131_v38  ;;  %s399_s28 = sld [smem:[#allocation3 + $0xb]]  ;;  %s406_s30 = sld [smem:[#allocation3 + $0xc]]  ;;  %v154_v44 = vmul.f32 %v153_v42, %v152_v41 }
  0x45   :  { %s759_s24 = smov (!%p394_p3, %s159_s24), 63  ;;  %s400_s29 = sld [smem:[#allocation5 + $0xb]] }
  0x46   :  { %s162_s7 = scalar_lea.vmem %s719_s2, %s759_s24  ;;  %s669_s8 = sld [smem:[#allocation5 + $0xc]]  ;;  %v155_v47 = vadd.f32 %v154_v44, %v143_v43 }
  0x47   :  { %s671_s9 = sld [smem:[#allocation3 + $0xd]]  ;;  %v163_v45 = vld [vmem:[%s162_s7] sm:$0x1]  ;;  %s676_s11 = sld [smem:[#allocation3 + $0xe]] }
  0x48   :  { %s673_s10 = sld [smem:[#allocation5 + $0xd]]  ;;  %s678_s3 = sld [smem:[#allocation5 + $0xe]]  ;;  %v165_v48 = vmul.f32 %v164_v46, %v163_v45 }
  0x49   :  { %s680_s12 = sld [smem:[#allocation3 + $0xf]] }
  0x4a   :  { %p169_p4 = scmp.gt.s32.totalorder %s399_s28, 0  ;;  %p401_p5 = scmp.lt.s32.totalorder %s399_s28, 63  ;;  %v166_v50 = vadd.f32 %v165_v48, %v155_v47 }
  0x4b   :  { %s682_s13 = sld [smem:[#allocation5 + $0xf]]  ;;  %p180_p6 = scmp.gt.s32.totalorder %s406_s30, 0  ;;  %v175_v49 = vstv %s400_s29 }
  0x4c   :  { %s761_s28 = smov (!%p169_p4, %s399_s28), 0  ;;  %p408_p7 = scmp.lt.s32.totalorder %s406_s30, 63  ;;  %v186_v53 = vstv %s669_s8 }
  0x4d   :  { %s763_s28 = smov (!%p401_p5, %s761_s28), 63  ;;  %s765_s30 = smov (!%p180_p6, %s406_s30), 0 }
  0x4e   :  { %s173_s15 = scalar_lea.vmem %s719_s2, %s763_s28  ;;  %p191_p8 = scmp.gt.s32.totalorder %s671_s9, 0  ;;  %v197_v57 = vstv %s673_s10  ;;  %v208_v61 = vstv %s678_s3 }
  0x4f   :  { %v174_v51 = vld [vmem:[%s173_s15] sm:$0x1]  ;;  %s767_s30 = smov (!%p408_p7, %s765_s30), 63  ;;  %p415_p9 = scmp.lt.s32.totalorder %s671_s9, 63 }
  0x50   :  { %v176_v52 = vmul.f32 %v175_v49, %v174_v51  ;;  %s192_s17 = scalar_select %p191_p8, %s671_s9, 0 }
  0x51   :  { %s184_s20 = scalar_lea.vmem %s719_s2, %s767_s30  ;;  %p202_p10 = scmp.gt.s32.totalorder %s676_s11, 0  ;;  %v219_v1 = vstv %s682_s13 }
  0x52   :  { %v177_v54 = vadd.f32 %v176_v52, %v166_v50  ;;  %v185_v55 = vld [vmem:[%s184_s20] sm:$0x1]  ;;  %p422_p11 = scmp.lt.s32.totalorder %s676_s11, 63  ;;  %s769_s17 = smov (!%p415_p9, %s192_s17), 63 }
  0x53   :  { %v187_v56 = vmul.f32 %v186_v53, %v185_v55  ;;  %s771_s11 = smov (!%p202_p10, %s676_s11), 0  ;;  %s195_s23 = scalar_lea.vmem %s719_s2, %s769_s17 }
  0x54   :  { %p213_p12 = scmp.gt.s32.totalorder %s680_s12, 0  ;;  %v196_v59 = vld [vmem:[%s195_s23] sm:$0x1]  ;;  %s773_s11 = smov (!%p422_p11, %s771_s11), 63 }
  0x55   :  { %v188_v58 = vadd.f32 %v187_v56, %v177_v54  ;;  %v198_v60 = vmul.f32 %v197_v57, %v196_v59  ;;  %s206_s25 = scalar_lea.vmem %s719_s2, %s773_s11  ;;  %p429_p13 = scmp.lt.s32.totalorder %s680_s12, 63 }
  0x56   :  { %s214_s0 = scalar_select %p213_p12, %s680_s12, 0  ;;  %v207_v63 = vld [vmem:[%s206_s25] sm:$0x1] }
  0x57   :  { %v199_v62 = vadd.f32 %v198_v60, %v188_v58  ;;  %v209_v0 = vmul.f32 %v208_v61, %v207_v63 }
  0x58   :  { %s775_s0 = smov (!%p429_p13, %s214_s0), 63 }
  0x59   :  { %v210_v2 = vadd.f32 %v209_v0, %v199_v62  ;;  %s217_s28 = scalar_lea.vmem %s719_s2, %s775_s0 }
  0x5a   :  { %v218_v3 = vld [vmem:[%s217_s28] sm:$0x1] }
  0x5b   :  { %v220_v4 = vmul.f32 %v219_v1, %v218_v3 }
  0x5d   :  { %v221_v5 = vadd.f32 %v220_v4, %v210_v2 }
  0x5f   :  { %222 = vst.msk [vmem:[#allocation2 + $0x1] sm:$0x1] %vm132_vm2, %v221_v5 }
  0x66   :  { %v223_v6 = vld [vmem:[#allocation2] sm:$0xff] }
  0x67   :  { %481 = vmatmul.mubr.msk.f32.vlgmr.msra.gmra.mrb[0].mxu0 %vm42_vm0, %v223_v6 }
 0x13a   :  { %v297_v7 = vpop.f32.mrb[0].mxu0 }
 0x13b   :  { %301 = vst [vmem:[%s721_s4] sm:$0xff] %v297_v7  ;;  %v482_v8 = vpop.f32.mrb[1].mxu0 }
 0x13c   :  { %306 = vsyncpa [#allocation4], 1 }
 0x13d   :  { %307 = vsyncpa [#allocation6], 1 }

</bundles_post_ra>
